<compile_context>
chip_gen: v5e
topology: v5e:2x2
jax: 0.10.0
libtpu: 0.0.40
codegen_flags: <defaults>
</compile_context>

<pallas_src>
import functools

import jax
import jax.numpy as jnp
from jax.experimental import pallas as pl
from jax.experimental.pallas import tpu as pltpu


def conv_band_kernel(x_ref, w_ref, b_ref, o_ref, *, n_img, h, lanes):
    """3x3 conv + bias + ReLU as three banded GEMMs per image.

    x_ref : (N*(H+2), W*Cin)   H-padded NHWC rows, image-major, pixel-major/
                               channel-minor within a row
    w_ref : (3, W*Cin, W*Cout) one banded weight matrix per vertical tap kh
    b_ref : (1, W*Cout)        bias tiled per output pixel
    o_ref : (N*H, W*Cout)      lane-dense output slab (last dim = 128)
    """
    bias = b_ref[...]                                   # (1, lanes)
    n_taps = w_ref.shape[0]                             # 3 (static)
    for n in range(n_img):                              # static unroll (N=2)
        base = n * (h + 2)
        acc = jnp.zeros((h, lanes), jnp.float32)
        for kh in range(n_taps):                        # static unroll (3)
            xk = x_ref[pl.ds(base + kh, h), :]          # (H, W*Cin)
            acc = acc + jnp.dot(
                xk, w_ref[kh],
                preferred_element_type=jnp.float32,
                precision=jax.lax.Precision.HIGHEST)
        out = jnp.maximum(acc + bias, 0.0)              # fused bias + ReLU (VPU)
        o_ref[pl.ds(n * h, h), :] = out.astype(o_ref.dtype)


def prepare_params(w, b, width):
    """One-time (init) expansion of conv params into kernel-ready matrices.

    w : (3, 3, Cin, Cout) HWIO conv weights
    b : (Cout,) bias
    Returns:
      w_band  : (3, W*Cin, W*Cout)  banded matrices; band kh, block (w', w) is
                W[kh, kw] where kw = w - w' + 1 (zero outside the 3-wide band,
                which implements SAME zero-padding in width).
      b_tiled : (1, W*Cout)
    """
    k_h, k_w, c_in, c_out = w.shape
    lanes = width * c_out
    assert lanes % 128 == 0, "lane-dense layout requires W*Cout % 128 == 0"
    bands = []
    for kh in range(k_h):
        band = jnp.zeros((width * c_in, lanes), w.dtype)
        for kw in range(k_w):
            # out col block w receives input col block w' = w + kw - 1
            # => ones on diagonal k = 1 - kw.
            band = band + jnp.kron(
                jnp.eye(width, k=1 - kw, dtype=w.dtype), w[kh, kw])
        bands.append(band)
    w_band = jnp.stack(bands)                           # (3, W*Cin, W*Cout)
    b_tiled = jnp.tile(b, width).reshape(1, lanes)      # (1, W*Cout)
    return w_band, b_tiled


def get_model_forward(x_nchw, w_band, b_tiled):
    """Pallas-backed forward of get_Model.

    x_nchw  : (N, Cin, H, W) float32
    w_band  : (3, W*Cin, W*Cout) float32  (from prepare_params, hoisted)
    b_tiled : (1, W*Cout) float32         (from prepare_params, hoisted)
    returns : (N, Cout, H, W) float32
    """
    n_img, c_in, h, width = x_nchw.shape
    lanes = b_tiled.shape[-1]
    c_out = lanes // width
    rows = n_img * h

    # Single small XLA layout pre-pass (~9 KB): NCHW -> NHWC rows, zero-pad one
    # row above/below each image, flatten image-major.  (Width padding is
    # handled by the band structure of w_band; no im2col materialization.)
    x_rows = jnp.transpose(x_nchw, (0, 2, 3, 1)).reshape(n_img, h, width * c_in)
    x_rows = jnp.pad(x_rows, ((0, 0), (1, 1), (0, 0)))
    x_rows = x_rows.reshape(n_img * (h + 2), width * c_in)

    kernel = functools.partial(conv_band_kernel, n_img=n_img, h=h, lanes=lanes)

    out_flat = pl.pallas_call(
        kernel,
        out_shape=jax.ShapeDtypeStruct((rows, lanes), x_nchw.dtype),
        grid=(1,),  # single step: one TC does all ~0.8 MFLOP; no serial loop
        in_specs=[
            pl.BlockSpec(x_rows.shape, lambda i: (0, 0)),
            pl.BlockSpec(w_band.shape, lambda i: (0, 0, 0)),
            pl.BlockSpec(b_tiled.shape, lambda i: (0, 0)),
        ],
        out_specs=pl.BlockSpec((rows, lanes), lambda i: (0, 0)),
        compiler_params=pltpu.CompilerParams(
            dimension_semantics=("arbitrary",)),
    )(x_rows, w_band, b_tiled)

    # Contiguous un-flatten + NHWC -> NCHW to match PyTorch layout.
    out_nhwc = out_flat.reshape(n_img, h, width, c_out)
    return jnp.transpose(out_nhwc, (0, 3, 1, 2))


if __name__ == "__main__":
    key = jax.random.PRNGKey(0)
    k_x, k_w, k_b = jax.random.split(key, 3)

    N, Cin, H, W, Cout = 2, 4, 16, 16, 8
    x = jax.random.normal(k_x, (N, Cin, H, W), dtype=jnp.float32)
    # deterministic parameter init (synthetic; no checkpoint load)
    w = jax.random.normal(k_w, (3, 3, Cin, Cout), dtype=jnp.float32) * 0.1
    b = jax.random.normal(k_b, (Cout,), dtype=jnp.float32) * 0.1

    # ---- one-time init: expand params to kernel-ready layout (hoisted) -----
    w_band, b_tiled = prepare_params(w, b, W)
    w_band, b_tiled = jax.block_until_ready((w_band, b_tiled))

    fwd = jax.jit(get_model_forward)
    y = fwd(x, w_band, b_tiled)
    jax.block_until_ready(y)

    # lightweight correctness check against pure-JAX reference (same precision)
    x_nhwc = jnp.transpose(x, (0, 2, 3, 1))
    ref = jax.lax.conv_general_dilated(
        x_nhwc, w, window_strides=(1, 1), padding="SAME",
        dimension_numbers=("NHWC", "HWIO", "NHWC"),
        precision=jax.lax.Precision.HIGHEST,
    ) + b
    ref = jnp.maximum(ref, 0.0)
    ref = jnp.transpose(ref, (0, 3, 1, 2))
    assert y.shape == (N, Cout, H, W)
    assert jnp.allclose(y, ref, atol=1e-4, rtol=1e-4)

    print("KERNEL_OK")
</pallas_src>

<mosaic_0001>
module attributes {stable_mosaic.version = 11 : i64} {
  func.func @conv_band_kernel(%arg0: i32, %arg1: memref<36x64xf32, #tpu.memory_space<vmem>>, %arg2: memref<3x64x128xf32, #tpu.memory_space<vmem>>, %arg3: memref<1x128xf32, #tpu.memory_space<vmem>>, %arg4: memref<32x128xf32, #tpu.memory_space<vmem>>) attributes {dimension_semantics = [#tpu.dimension_semantics<arbitrary>], iteration_bounds = array<i64: 1>, scalar_prefetch = 0 : i64, scratch_operands = 0 : i64, tpu.core_type = #tpu.core_type<tc>, window_params = [{pipeline_mode = #tpu.pipeline_mode<synchronous>, transform_indices = @transform_0, window_bounds = array<i64: 36, 64>}, {pipeline_mode = #tpu.pipeline_mode<synchronous>, transform_indices = @transform_1, window_bounds = array<i64: 3, 64, 128>}, {pipeline_mode = #tpu.pipeline_mode<synchronous>, transform_indices = @transform_2, window_bounds = array<i64: 1, 128>}, {pipeline_mode = #tpu.pipeline_mode<synchronous>, transform_indices = @transform_3, window_bounds = array<i64: 32, 128>}]} {
    %c0 = arith.constant 0 : index
    %c0_0 = arith.constant 0 : index
    %0 = vector.load %arg3[%c0, %c0_0] : memref<1x128xf32, #tpu.memory_space<vmem>>, vector<1x128xf32>
    %cst = arith.constant 0.000000e+00 : f32
    %1 = vector.broadcast %cst : f32 to vector<16x128xf32>
    %c0_1 = arith.constant 0 : index
    %c0_2 = arith.constant 0 : index
    %2 = vector.load %arg1[%c0_1, %c0_2] : memref<36x64xf32, #tpu.memory_space<vmem>>, vector<16x64xf32>
    %c0_3 = arith.constant 0 : index
    %c0_4 = arith.constant 0 : index
    %c0_5 = arith.constant 0 : index
    %3 = vector.load %arg2[%c0_3, %c0_4, %c0_5] : memref<3x64x128xf32, #tpu.memory_space<vmem>>, vector<1x64x128xf32>
    %4 = vector.shape_cast %3 : vector<1x64x128xf32> to vector<64x128xf32>
    %cst_6 = arith.constant dense<0.000000e+00> : vector<16x128xf32>
    %5 = tpu.matmul %2, %4, %cst_6 {dimension_numbers = #tpu.dot_dimension_numbers<[1], [0], [0], [1], [0, 0, 1, 1], [], []>, precision = #tpu.contract_precision<fp32>} : vector<16x64xf32>, vector<64x128xf32>, vector<16x128xf32> -> vector<16x128xf32>
    %6 = arith.addf %1, %5 : vector<16x128xf32>
    %c1 = arith.constant 1 : index
    %c0_7 = arith.constant 0 : index
    %7 = vector.load %arg1[%c1, %c0_7] : memref<36x64xf32, #tpu.memory_space<vmem>>, vector<16x64xf32>
    %c1_8 = arith.constant 1 : index
    %c0_9 = arith.constant 0 : index
    %c0_10 = arith.constant 0 : index
    %8 = vector.load %arg2[%c1_8, %c0_9, %c0_10] : memref<3x64x128xf32, #tpu.memory_space<vmem>>, vector<1x64x128xf32>
    %9 = vector.shape_cast %8 : vector<1x64x128xf32> to vector<64x128xf32>
    %cst_11 = arith.constant dense<0.000000e+00> : vector<16x128xf32>
    %10 = tpu.matmul %7, %9, %cst_11 {dimension_numbers = #tpu.dot_dimension_numbers<[1], [0], [0], [1], [0, 0, 1, 1], [], []>, precision = #tpu.contract_precision<fp32>} : vector<16x64xf32>, vector<64x128xf32>, vector<16x128xf32> -> vector<16x128xf32>
    %11 = arith.addf %6, %10 : vector<16x128xf32>
    %c2 = arith.constant 2 : index
    %c0_12 = arith.constant 0 : index
    %12 = vector.load %arg1[%c2, %c0_12] : memref<36x64xf32, #tpu.memory_space<vmem>>, vector<16x64xf32>
    %c2_13 = arith.constant 2 : index
    %c0_14 = arith.constant 0 : index
    %c0_15 = arith.constant 0 : index
    %13 = vector.load %arg2[%c2_13, %c0_14, %c0_15] : memref<3x64x128xf32, #tpu.memory_space<vmem>>, vector<1x64x128xf32>
    %14 = vector.shape_cast %13 : vector<1x64x128xf32> to vector<64x128xf32>
    %cst_16 = arith.constant dense<0.000000e+00> : vector<16x128xf32>
    %15 = tpu.matmul %12, %14, %cst_16 {dimension_numbers = #tpu.dot_dimension_numbers<[1], [0], [0], [1], [0, 0, 1, 1], [], []>, precision = #tpu.contract_precision<fp32>} : vector<16x64xf32>, vector<64x128xf32>, vector<16x128xf32> -> vector<16x128xf32>
    %16 = arith.addf %11, %15 : vector<16x128xf32>
    %17 = vector.broadcast %0 : vector<1x128xf32> to vector<16x128xf32>
    %18 = arith.addf %16, %17 : vector<16x128xf32>
    %cst_17 = arith.constant 0.000000e+00 : f32
    %19 = vector.broadcast %cst_17 : f32 to vector<16x128xf32>
    %20 = arith.maximumf %18, %19 : vector<16x128xf32>
    %c0_18 = arith.constant 0 : index
    %c0_19 = arith.constant 0 : index
    %21 = vector.load %arg4[%c0_18, %c0_19] : memref<32x128xf32, #tpu.memory_space<vmem>>, vector<16x128xf32>
    tpu.vector_store %arg4[%c0_18, %c0_19], %20 {strides = array<i32>} : memref<32x128xf32, #tpu.memory_space<vmem>>, vector<16x128xf32>,
    %cst_20 = arith.constant 0.000000e+00 : f32
    %22 = vector.broadcast %cst_20 : f32 to vector<16x128xf32>
    %c18 = arith.constant 18 : index
    %c0_21 = arith.constant 0 : index
    %23 = vector.load %arg1[%c18, %c0_21] : memref<36x64xf32, #tpu.memory_space<vmem>>, vector<16x64xf32>
    %c0_22 = arith.constant 0 : index
    %c0_23 = arith.constant 0 : index
    %c0_24 = arith.constant 0 : index
    %24 = vector.load %arg2[%c0_22, %c0_23, %c0_24] : memref<3x64x128xf32, #tpu.memory_space<vmem>>, vector<1x64x128xf32>
    %25 = vector.shape_cast %24 : vector<1x64x128xf32> to vector<64x128xf32>
    %cst_25 = arith.constant dense<0.000000e+00> : vector<16x128xf32>
    %26 = tpu.matmul %23, %25, %cst_25 {dimension_numbers = #tpu.dot_dimension_numbers<[1], [0], [0], [1], [0, 0, 1, 1], [], []>, precision = #tpu.contract_precision<fp32>} : vector<16x64xf32>, vector<64x128xf32>, vector<16x128xf32> -> vector<16x128xf32>
    %27 = arith.addf %22, %26 : vector<16x128xf32>
    %c19 = arith.constant 19 : index
    %c0_26 = arith.constant 0 : index
    %28 = vector.load %arg1[%c19, %c0_26] : memref<36x64xf32, #tpu.memory_space<vmem>>, vector<16x64xf32>
    %c1_27 = arith.constant 1 : index
    %c0_28 = arith.constant 0 : index
    %c0_29 = arith.constant 0 : index
    %29 = vector.load %arg2[%c1_27, %c0_28, %c0_29] : memref<3x64x128xf32, #tpu.memory_space<vmem>>, vector<1x64x128xf32>
    %30 = vector.shape_cast %29 : vector<1x64x128xf32> to vector<64x128xf32>
    %cst_30 = arith.constant dense<0.000000e+00> : vector<16x128xf32>
    %31 = tpu.matmul %28, %30, %cst_30 {dimension_numbers = #tpu.dot_dimension_numbers<[1], [0], [0], [1], [0, 0, 1, 1], [], []>, precision = #tpu.contract_precision<fp32>} : vector<16x64xf32>, vector<64x128xf32>, vector<16x128xf32> -> vector<16x128xf32>
    %32 = arith.addf %27, %31 : vector<16x128xf32>
    %c20 = arith.constant 20 : index
    %c0_31 = arith.constant 0 : index
    %33 = vector.load %arg1[%c20, %c0_31] : memref<36x64xf32, #tpu.memory_space<vmem>>, vector<16x64xf32>
    %c2_32 = arith.constant 2 : index
    %c0_33 = arith.constant 0 : index
    %c0_34 = arith.constant 0 : index
    %34 = vector.load %arg2[%c2_32, %c0_33, %c0_34] : memref<3x64x128xf32, #tpu.memory_space<vmem>>, vector<1x64x128xf32>
    %35 = vector.shape_cast %34 : vector<1x64x128xf32> to vector<64x128xf32>
    %cst_35 = arith.constant dense<0.000000e+00> : vector<16x128xf32>
    %36 = tpu.matmul %33, %35, %cst_35 {dimension_numbers = #tpu.dot_dimension_numbers<[1], [0], [0], [1], [0, 0, 1, 1], [], []>, precision = #tpu.contract_precision<fp32>} : vector<16x64xf32>, vector<64x128xf32>, vector<16x128xf32> -> vector<16x128xf32>
    %37 = arith.addf %32, %36 : vector<16x128xf32>
    %38 = vector.broadcast %0 : vector<1x128xf32> to vector<16x128xf32>
    %39 = arith.addf %37, %38 : vector<16x128xf32>
    %cst_36 = arith.constant 0.000000e+00 : f32
    %40 = vector.broadcast %cst_36 : f32 to vector<16x128xf32>
    %41 = arith.maximumf %39, %40 : vector<16x128xf32>
    %c16 = arith.constant 16 : index
    %c0_37 = arith.constant 0 : index
    %42 = vector.load %arg4[%c16, %c0_37] : memref<32x128xf32, #tpu.memory_space<vmem>>, vector<16x128xf32>
    tpu.vector_store %arg4[%c16, %c0_37], %41 {strides = array<i32>} : memref<32x128xf32, #tpu.memory_space<vmem>>, vector<16x128xf32>,
    return
  }
  func.func @transform_0(%arg0: i32) -> (i32, i32) {
    %c0_i32 = arith.constant 0 : i32
    %c0_i32_0 = arith.constant 0 : i32
    %c0_i32_1 = arith.constant 0 : i32
    return %c0_i32, %c0_i32_0 : i32, i32
  }
  func.func @transform_1(%arg0: i32) -> (i32, i32, i32) {
    %c0_i32 = arith.constant 0 : i32
    %c0_i32_0 = arith.constant 0 : i32
    %c0_i32_1 = arith.constant 0 : i32
    %c0_i32_2 = arith.constant 0 : i32
    return %c0_i32, %c0_i32_0, %c0_i32_1 : i32, i32, i32
  }
  func.func @transform_2(%arg0: i32) -> (i32, i32) {
    %c0_i32 = arith.constant 0 : i32
    %c0_i32_0 = arith.constant 0 : i32
    %c0_i32_1 = arith.constant 0 : i32
    return %c0_i32, %c0_i32_0 : i32, i32
  }
  func.func @transform_3(%arg0: i32) -> (i32, i32) {
    %c0_i32 = arith.constant 0 : i32
    %c0_i32_0 = arith.constant 0 : i32
    %c0_i32_1 = arith.constant 0 : i32
    return %c0_i32, %c0_i32_0 : i32, i32
  }
}

</mosaic_0001>

<bundles_post_ra>
// kernel: get_model_forward.1
= control target key start
LH: loop header
LB: loop body
LE: loop exit
PB: predicated region body
PF: predicated region fallthrough
CT: control target
= control target key end

     0   :  { %vm36_vm0 = vcmask 523264   ;;  %s2691_s1 = inlined_call_operand.vmem [shape: f32[3,64,128], index: 1, kind: input, shape index: {}]   ;;  %s2692_s0 = inlined_call_operand.vmem [shape: f32[36,64], index: 0, kind: input, shape index: {}]   ;;  %s2693_s2 = inlined_call_operand.vmem [shape: f32[1,128], index: 2, kind: input, shape index: {}]   ;;  %s2694_s3 = inlined_call_operand.vmem [shape: f32[32,128], index: 3, kind: output, shape index: {}]  }
   0x1   :  { %v1752_v0 = vld [vmem:[%s2691_s1 + $0x78] sm:$0xff]  ;;  %v1751_v1 = vld [vmem:[%s2691_s1 + $0x70] sm:$0xff]  ;;  %v1750_v2 = vld [vmem:[%s2691_s1 + $0x68] sm:$0xff] }
   0x2   :  { %v1807_v3 = vand.u32 4294901760, %v1752_v0  ;;  %v1809_v4 = vand.u32 4294901760, %v1751_v1  ;;  %v1811_v5 = vand.u32 4294901760, %v1750_v2  ;;  %v1749_v6 = vld [vmem:[%s2691_s1 + $0x60] sm:$0xff]  ;;  %v1748_v7 = vld [vmem:[%s2691_s1 + $0x58] sm:$0xff]  ;;  %v1747_v8 = vld [vmem:[%s2691_s1 + $0x50] sm:$0xff] }
   0x3   :  { %v1822_v9 = vand.u32 4294901760, %v1749_v6  ;;  %v1824_v10 = vand.u32 4294901760, %v1748_v7  ;;  %v1826_v11 = vand.u32 4294901760, %v1747_v8  ;;  %v1746_v12 = vld [vmem:[%s2691_s1 + $0x48] sm:$0xff]  ;;  %v1745_v13 = vld [vmem:[%s2691_s1 + $0x40] sm:$0xff]  ;;  %v24_v35 = vld [vmem:[%s2691_s1 + $0x38] sm:$0xff] }
   0x4   :  { %v25_v14 = vld [vmem:[%s2692_s0 + $0x1] sm:$0xff]  ;;  %52 = vmatpush.msra.mxu0 %v1807_v3  ;;  %v1839_v15 = vsub.f32 %v1752_v0, %v1807_v3  ;;  %201 = vmatpush.msra.mxu3 %v1807_v3  ;;  %v1843_v16 = vsub.f32 %v1751_v1, %v1809_v4  ;;  %v1846_v17 = vsub.f32 %v1750_v2, %v1811_v5  ;;  %v1848_v18 = vand.u32 4294901760, %v1746_v12  ;;  %v23_v37 = vld [vmem:[%s2691_s1 + $0x30] sm:$0xff]  ;;  %v20_v60 = vld [vmem:[%s2691_s1 + $0x18] sm:$0xff] }
   0x5   :  { %v1851_v19 = vsub.f32 %v1749_v6, %v1822_v9  ;;  %v1854_v20 = vsub.f32 %v1748_v7, %v1824_v10  ;;  %v1856_v21 = vand.u32 4294901760, %v1745_v13  ;;  %v1859_v22 = vsub.f32 %v1747_v8, %v1826_v11  ;;  %v26_v42 = vld [vmem:[%s2692_s0 + $0x9] sm:$0xff]  ;;  %v21_v51 = vld [vmem:[%s2691_s1 + $0x20] sm:$0xff] }
   0x6   :  { %54 = vmatpush.msra.mxu0 %v1809_v4  ;;  %159 = vmatpush.msra.mxu2 %v1839_v15  ;;  %v1864_v23 = vand.u32 4294901760, %v1839_v15  ;;  %v1867_v24 = vand.u32 4294901760, %v1843_v16  ;;  %v1870_v25 = vand.u32 4294901760, %v1846_v17  ;;  %v38_v26 = vsel %vm36_vm0, %v25_v14, 0  ;;  %v22_v43 = vld [vmem:[%s2691_s1 + $0x28] sm:$0xff]  ;;  %v19_v1 = vld [vmem:[%s2691_s1 + $0x10] sm:$0xff] }
   0x7   :  { %2749 = vst [vmem:[#allocation2_spill] sm:$0xff] %v1854_v20  ;;  %203 = vmatpush.msra.mxu3 %v1809_v4  ;;  %v1875_v27 = vand.u32 4294901760, %v1851_v19  ;;  %v1877_v28 = vand.u32 4294901760, %v38_v26  ;;  %v1880_v29 = vand.u32 4294901760, %v1854_v20  ;;  %v1883_v30 = vsub.f32 %v1746_v12, %v1848_v18 }
   0x8   :  { %2750 = vst [vmem:[#allocation3_spill] sm:$0xff] %v1859_v22  ;;  %56 = vmatpush.msra.mxu0 %v1811_v5  ;;  %162 = vmatpush.msra.mxu2 %v1843_v16  ;;  %v95_v31 = vsub.f32 %v1839_v15, %v1864_v23  ;;  %v101_v32 = vsub.f32 %v1843_v16, %v1867_v24  ;;  %v1894_v34 = vand.u32 4294901760, %v1859_v22  ;;  %v1927_v46 = vand.u32 4294901760, %v24_v35 }
   0x9   :  { %2751 = vst [vmem:[#allocation4_spill] sm:$0xff] %v1870_v25  ;;  %v107_v33 = vsub.f32 %v1846_v17, %v1870_v25  ;;  %205 = vmatpush.msra.mxu3 %v1811_v5  ;;  %v1901_v36 = vsub.f32 %v38_v26, %v1877_v28  ;;  %v113_v40 = vsub.f32 %v1851_v19, %v1875_v27  ;;  %v1936_v49 = vand.u32 4294901760, %v1883_v30 }
   0xa   :  { %2752 = vst [vmem:[#allocation5_spill] sm:$0xff] %v1875_v27  ;;  %58 = vmatpush.msra.mxu0 %v1822_v9  ;;  %v1907_v38 = vand.u32 4294901760, %v95_v31  ;;  %165 = vmatpush.msra.mxu2 %v1846_v17  ;;  %v1910_v39 = vand.u32 4294901760, %v101_v32  ;;  %v1915_v41 = vsub.f32 %v1745_v13, %v1856_v21  ;;  %v119_v45 = vsub.f32 %v1854_v20, %v1880_v29  ;;  %v18_v31 = vld [vmem:[%s2691_s1 + $0x8] sm:$0xff] }
   0xb   :  { %2753 = vst [vmem:[#allocation6_spill] sm:$0xff] %v1880_v29  ;;  %207 = vmatpush.msra.mxu3 %v1822_v9  ;;  %v2696_v44 = vand.u32 4294901760, %v1901_v36  ;;  %v1931_v47 = vand.u32 4294901760, %v107_v33  ;;  %v125_v48 = vsub.f32 %v1859_v22, %v1894_v34  ;;  %v1938_v50 = vand.u32 4294901760, %v23_v37 }
   0xc   :  { %2754 = vst [vmem:[#allocation7_spill] sm:$0xff] %v1883_v30  ;;  %60 = vmatpush.msra.mxu0 %v1824_v10  ;;  %97 = vmatpush.msra.mxu1 %v1907_v38  ;;  %v1949_v53 = vsub.f32 %v24_v35, %v1927_v46  ;;  %v41_v54 = vsel %vm36_vm0, %v26_v42, 0  ;;  %v1952_v55 = vand.u32 4294901760, %v22_v43  ;;  %v1956_v56 = vand.u32 4294901760, %v113_v40 }
   0xd   :  { %2755 = vst [vmem:[#allocation8_spill] sm:$0xff] %v1915_v41  ;;  %168 = vmatpush.msra.mxu2 %v1851_v19  ;;  %209 = vmatpush.msra.mxu3 %v1824_v10  ;;  %v70_v52 = vsub.f32 %v1901_v36, %v2696_v44  ;;  %v1959_v57 = vand.u32 4294901760, %v1915_v41  ;;  %v1962_v58 = vsub.f32 %v23_v37, %v1938_v50  ;;  %v1964_v59 = vand.u32 4294901760, %v41_v54 }
   0xe   :  { %62 = vmatpush.msra.mxu0 %v1826_v11  ;;  %103 = vmatpush.msra.mxu1 %v1910_v39  ;;  %v1972_v62 = vand.u32 4294901760, %v1949_v53  ;;  %v1975_v63 = vsub.f32 %v22_v43, %v1952_v55  ;;  %v1977_v0 = vand.u32 4294901760, %v21_v51  ;;  %v1984_v2 = vand.u32 4294901760, %v119_v45  ;;  %v17_v43 = vld [vmem:[%s2691_s1] sm:$0xff] }
   0xf   :  { %2756 = vst [vmem:[#allocation9_spill] sm:$0xff] %v1962_v58  ;;  %171 = vmatpush.msra.mxu2 %v1854_v20  ;;  %211 = vmatpush.msra.mxu3 %v1826_v11  ;;  %v71_v61 = vand.u32 4294901760, %v70_v52  ;;  %v131_v6 = vsub.f32 %v1883_v30, %v1936_v49  ;;  %v1989_v7 = vand.u32 4294901760, %v1962_v58  ;;  %v1992_v8 = vsub.f32 %v41_v54, %v1964_v59  ;;  %v15_v45 = vld [vmem:[%s2692_s0] sm:$0xff] }
  0x10   :  { %2757 = vst [vmem:[#allocation10_spill] sm:$0xff] %v1972_v62  ;;  %64 = vmatpush.msra.mxu0 %v1848_v18  ;;  %109 = vmatpush.msra.mxu1 %v1931_v47  ;;  %v1996_v12 = vand.u32 4294901760, %v125_v48  ;;  %v369_v13 = vsub.f32 %v1949_v53, %v1972_v62  ;;  %v2001_v14 = vsub.f32 %v21_v51, %v1977_v0  ;;  %v2003_v26 = vand.u32 4294901760, %v20_v60 }
  0x11   :  { %2758 = vst [vmem:[#allocation11_spill] sm:$0xff] %v1975_v63  ;;  %174 = vmatpush.msra.mxu2 %v1859_v22  ;;  %213 = vmatpush.msra.mxu3 %v1848_v18  ;;  %v137_v32 = vsub.f32 %v1915_v41, %v1959_v57  ;;  %v2695_v33 = vand.u32 4294901760, %v1992_v8  ;;  %v2014_v35 = vand.u32 4294901760, %v1975_v63  ;;  %v2016_v37 = vand.u32 4294901760, %v19_v1 }
  0x12   :  { %2759 = vst [vmem:[#allocation12_spill] sm:$0xff] %v1977_v0  ;;  %66 = vmatpush.msra.mxu0 %v1856_v21  ;;  %115 = vmatpush.msra.mxu1 %v1956_v56  ;;  %v375_v40 = vsub.f32 %v1962_v58, %v1989_v7  ;;  %v2022_v42 = vsub.f32 %v20_v60, %v2003_v26  ;;  %v2032_v48 = vand.u32 4294901760, %v131_v6  ;;  %v2038_v52 = vand.u32 4294901760, %v2001_v14 }
  0x13   :  { %2760 = vst [vmem:[#allocation13_spill] sm:$0xff] %v1989_v7  ;;  %72 = vmatmul.f32.vlgmr.msra.gmra.mxu0 %v71_v61  ;;  %177 = vmatpush.msra.mxu2 %v1883_v30  ;;  %v78_v51 = vsub.f32 %v1992_v8, %v2695_v33  ;;  %v2040_v54 = vand.u32 4294901760, %v18_v31  ;;  %v2044_v60 = vand.u32 4294901760, %v369_v13  ;;  %v2047_v61 = vsub.f32 %v19_v1, %v2016_v37 }
  0x14   :  { %2761 = vst [vmem:[#allocation14_spill] sm:$0xff] %v2001_v14  ;;  %121 = vmatpush.msra.mxu1 %v1984_v2  ;;  %240 = vmatpush.msrb.mxu0 %v1864_v23  ;;  %v2051_v6 = vand.u32 4294901760, %v137_v32  ;;  %v381_v33 = vsub.f32 %v1975_v63, %v2014_v35  ;;  %v2055_v44 = vand.u32 4294901760, %v17_v43  ;;  %v2771_v13 = vand.u32 4294901760, %v1901_v36 }
  0x15   :  { %2762 = vst [vmem:[#allocation15_spill] sm:$0xff] %v2003_v26  ;;  %180 = vmatpush.msra.mxu2 %v1915_v41  ;;  %215 = vmatpush.msra.mxu3 %v1856_v21  ;;  %v312_v41 = vsel %vm36_vm0, %v15_v45, 0  ;;  %v2061_v1 = vand.u32 4294901760, %v375_v40  ;;  %v2064_v30 = vand.u32 4294901760, %v2022_v42  ;;  %v79_v32 = vand.u32 4294901760, %v78_v51 }
  0x16   :  { %2763 = vst [vmem:[#allocation16_spill] sm:$0xff] %v2014_v35  ;;  %127 = vmatpush.msra.mxu1 %v1996_v12  ;;  %244 = vmatpush.msrb.mxu0 %v1867_v24  ;;  %v2066_v22 = vand.u32 4294901760, %v312_v41  ;;  %v387_v45 = vsub.f32 %v2001_v14, %v2038_v52  ;;  %v2073_v20 = vsub.f32 %v18_v31, %v2040_v54  ;;  %v2082_v40 = vand.u32 4294901760, %v381_v33 }
  0x17   :  { %2764 = vst [vmem:[#allocation17_spill] sm:$0xff] %v2016_v37  ;;  %183 = vmatmul.f32.vlgmr.msra.gmra.mxu2 %v1901_v36  ;;  %219 = vmatmul.f32.vlgmr.msra.gmra.mxu3 %v2771_v13  ;;  %v2078_v36 = vand.u32 4294901760, %v2047_v61  ;;  %v2085_v51 = vsub.f32 %v17_v43, %v2055_v44  ;;  %v393_v31 = vsub.f32 %v2022_v42, %v2064_v30 }
  0x18   :  { %2765 = vst [vmem:[#allocation18_spill] sm:$0xff] %v2022_v42  ;;  %326 = vmatpush.msrb.mxu2 %v1927_v46  ;;  %133 = vmatpush.msra.mxu1 %v2032_v48  ;;  %v2092_v13 = vsub.f32 %v312_v41, %v2066_v22  ;;  %v2098_v33 = vand.u32 4294901760, %v387_v45  ;;  %v2101_v43 = vand.u32 4294901760, %v2073_v20 }
  0x19   :  { %2766 = vst [vmem:[#allocation19_spill] sm:$0xff] %v2038_v52  ;;  %248 = vmatpush.msrb.mxu0 %v1870_v25  ;;  %371 = vmatpush.msrb.mxu3 %v2044_v60  ;;  %v399_v41 = vsub.f32 %v2047_v61, %v2078_v36 }
  0x1a   :  { %2767 = vst [vmem:[#allocation20_spill] sm:$0xff] %v2040_v54  ;;  %328 = vmatpush.msrb.mxu2 %v1938_v50  ;;  %139 = vmatpush.msra.mxu1 %v2051_v6 }
  0x1b   :  { %2768 = vst [vmem:[#allocation21_spill] sm:$0xff] %v2044_v60  ;;  %252 = vmatpush.msrb.mxu0 %v1875_v27  ;;  %377 = vmatpush.msrb.mxu3 %v2061_v1  ;;  %v16_v60 = vld [vmem:[%s2692_s0 + $0x8] sm:$0xff]  ;;  %v2708_v27 = vand.u32 4294901760, %v2092_v13 }
  0x1c   :  { %2769 = vst [vmem:[#allocation22_spill] sm:$0xff] %v2047_v61  ;;  %80 = vmatmul.f32.gmra.mxu0 %v79_v32  ;;  %141 = vmatmul.f32.vlgmr.msra.gmra.mxu1 %v1877_v28  ;;  %v2110_v32 = vand.u32 4294901760, %v2085_v51  ;;  %v315_v45 = vsel %vm36_vm0, %v16_v60, 0  ;;  %v2125_v60 = vand.u32 4294901760, %v399_v41 }
  0x1d   :  { %2770 = vst [vmem:[#allocation23_spill] sm:$0xff] %v2055_v44  ;;  %287 = vmatpush.msrb.mxu1 %v1807_v3  ;;  %330 = vmatpush.msrb.mxu2 %v1952_v55  ;;  %v2127_v25 = vand.u32 4294901760, %v315_v45 }
  0x1e   :  { %2772 = vst [vmem:[#allocation24_spill] sm:$0xff] %v2061_v1  ;;  %256 = vmatpush.msrb.mxu0 %v1880_v29  ;;  %383 = vmatpush.msrb.mxu3 %v2082_v40  ;;  %v2115_v1 = vand.u32 4294901760, %v393_v31  ;;  %v2782_v29 = vand.u32 4294901760, %v1992_v8  ;;  %v411_v31 = vsub.f32 %v2085_v51, %v2110_v32 }
  0x1f   :  { %2773 = vst [vmem:[#allocation25_spill] sm:$0xff] %v2064_v30  ;;  %289 = vmatpush.msrb.mxu1 %v1809_v4  ;;  %332 = vmatpush.msrb.mxu2 %v1977_v0  ;;  %v2145_v41 = vsub.f32 %v315_v45, %v2127_v25 }
  0x20   :  { %2774 = vst [vmem:[#allocation26_spill] sm:$0xff] %v2073_v20  ;;  %260 = vmatpush.msrb.mxu0 %v1894_v34  ;;  %389 = vmatpush.msrb.mxu3 %v2098_v33 }
  0x21   :  { %2775 = vst [vmem:[#allocation27_spill] sm:$0xff] %v2078_v36  ;;  %188 = vmatmul.f32.gmra.mxu2 %v1992_v8  ;;  %225 = vmatmul.f32.gmra.mxu3 %v2782_v29  ;;  %v344_v8 = vsub.f32 %v2092_v13, %v2708_v27 }
  0x22   :  { %2776 = vst [vmem:[#allocation28_spill] sm:$0xff] %v2082_v40  ;;  %v405_v40 = vsub.f32 %v2073_v20, %v2101_v43  ;;  %291 = vmatpush.msrb.mxu1 %v1811_v5  ;;  %334 = vmatpush.msrb.mxu2 %v2003_v26 }
  0x23   :  { %2777 = vst [vmem:[#allocation29_spill] sm:$0xff] %v2085_v51  ;;  %264 = vmatpush.msrb.mxu0 %v1936_v49  ;;  %395 = vmatpush.msrb.mxu3 %v2115_v1  ;;  %v345_v27 = vand.u32 4294901760, %v344_v8 }
  0x24   :  { %2778 = vst [vmem:[#allocation30_spill] sm:$0xff] %v2098_v33  ;;  %293 = vmatpush.msrb.mxu1 %v1822_v9  ;;  %336 = vmatpush.msrb.mxu2 %v2016_v37  ;;  %v2140_v29 = vand.u32 4294901760, %v405_v40  ;;  %v2709_v40 = vand.u32 4294901760, %v2145_v41  ;;  %v586_v33 = vld [vmem:[%s2692_s0 + $0xa] sm:$0xff] }
  0x25   :  { %2779 = vst [vmem:[#allocation31_spill] sm:$0xff] %v2101_v43  ;;  %268 = vmatpush.msrb.mxu0 %v1959_v57  ;;  %401 = vmatpush.msrb.mxu3 %v2125_v60 }
  0x26   :  { %2780 = vst [vmem:[#allocation32_spill] sm:$0xff] %v2110_v32  ;;  %145 = vmatmul.f32.gmra.mxu1 %v1964_v59  ;;  %270 = vmatmul.f32.vlgmr.msrb.gmra.mxu0 %v1877_v28  ;;  %v352_v45 = vsub.f32 %v2145_v41, %v2709_v40 }
  0x27   :  { %2781 = vst [vmem:[#allocation33_spill] sm:$0xff] %v2115_v1  ;;  %v2149_v1 = vand.u32 4294901760, %v411_v31  ;;  %295 = vmatpush.msrb.mxu1 %v1824_v10  ;;  %338 = vmatpush.msrb.mxu2 %v2040_v54  ;;  %v1759_v31 = vld [vmem:[%s2691_s1 + $0xb0] sm:$0xff] }
  0x28   :  { %2783 = vst [vmem:[#allocation34_spill] sm:$0xff] %v2125_v60  ;;  %407 = vmatpush.msrb.mxu3 %v2140_v29  ;;  %433 = vmatpush.msra.mxu0 %v1949_v53  ;;  %v353_v8 = vand.u32 4294901760, %v352_v45  ;;  %v585_v45 = vld [vmem:[%s2692_s0 + $0x2] sm:$0xff] }
  0x29   :  { %2784 = vst [vmem:[#allocation35_spill] sm:$0xff] %v2140_v29  ;;  %297 = vmatpush.msrb.mxu1 %v1826_v11  ;;  %340 = vmatpush.msrb.mxu2 %v2055_v44 }
  0x2a   :  { %2785 = vst [vmem:[#allocation36_spill] sm:$0xff] %v2149_v1  ;;  %413 = vmatpush.msrb.mxu3 %v2149_v1  ;;  %436 = vmatpush.msra.mxu0 %v1962_v58  ;;  %v1758_v1 = vld [vmem:[%s2691_s1 + $0xa8] sm:$0xff] }
  0x2b   :  { %299 = vmatpush.msrb.mxu1 %v1848_v18  ;;  %346 = vmatmul.f32.vlgmr.msrb.gmra.mxu2 %v345_v27  ;;  %v1760_v27 = vld [vmem:[%s2691_s1 + $0xb8] sm:$0xff]  ;;  %v2207_v29 = vand.u32 4294901760, %v1758_v1 }
  0x2c   :  { %415 = vmatmul.f32.vlgmr.msrb.gmra.mxu3 %v2066_v22  ;;  %514 = vmatpush.msra.mxu2 %v1972_v62  ;;  %v2182_v40 = vand.u32 4294901760, %v1760_v27 }
  0x2d   :  { %439 = vmatpush.msra.mxu0 %v1975_v63  ;;  %561 = vmatpush.msra.mxu3 %v1927_v46 }
  0x2e   :  { %301 = vmatpush.msrb.mxu1 %v1856_v21  ;;  %518 = vmatpush.msra.mxu2 %v1989_v7 }
  0x2f   :  { %442 = vmatpush.msra.mxu0 %v2001_v14  ;;  %563 = vmatpush.msra.mxu3 %v1938_v50 }
  0x30   :  { %274 = vmatmul.f32.gmra.mxu0 %v1964_v59  ;;  %303 = vmatmul.f32.vlgmr.msrb.gmra.mxu1 %v1877_v28  ;;  %v2188_v28 = vand.u32 4294901760, %v1759_v31 }
  0x31   :  { %475 = vmatpush.msra.mxu1 %v1927_v46  ;;  %522 = vmatpush.msra.mxu2 %v2014_v35  ;;  %v2200_v35 = vsub.f32 %v1760_v27, %v2182_v40  ;;  %v597_v27 = vsel %vm36_vm0, %v585_v45, 0  ;;  %v1755_v45 = vld [vmem:[%s2691_s1 + $0x90] sm:$0xff] }
  0x32   :  { %445 = vmatpush.msra.mxu0 %v2022_v42  ;;  %565 = vmatpush.msra.mxu3 %v1952_v55 }
  0x33   :  { %477 = vmatpush.msra.mxu1 %v1938_v50  ;;  %526 = vmatpush.msra.mxu2 %v2038_v52  ;;  %2786 = vst [vmem:[#allocation37_spill] sm:$0xff] %v2200_v35  ;;  %v1757_v52 = vld [vmem:[%s2691_s1 + $0xa0] sm:$0xff]  ;;  %v2225_v60 = vand.u32 4294901760, %v2200_v35 }
  0x34   :  { %448 = vmatpush.msra.mxu0 %v2047_v61  ;;  %567 = vmatpush.msra.mxu3 %v1977_v0  ;;  %v2217_v7 = vand.u32 4294901760, %v1757_v52 }
  0x35   :  { %354 = vmatmul.f32.gmra.mxu2 %v353_v8  ;;  %419 = vmatmul.f32.gmra.mxu3 %v2127_v25  ;;  %v2212_v8 = vsub.f32 %v1759_v31, %v2188_v28  ;;  %v2230_v31 = vsub.f32 %v1758_v1, %v2207_v29  ;;  %v1754_v1 = vld [vmem:[%s2691_s1 + $0x88] sm:$0xff] }
  0x36   :  { %479 = vmatpush.msra.mxu1 %v1952_v55  ;;  %530 = vmatpush.msra.mxu2 %v2064_v30  ;;  %v1756_v30 = vld [vmem:[%s2691_s1 + $0x98] sm:$0xff] }
  0x37   :  { %451 = vmatpush.msra.mxu0 %v2073_v20  ;;  %569 = vmatpush.msra.mxu3 %v2003_v26  ;;  %2787 = vst [vmem:[#allocation38_spill] sm:$0xff] %v2212_v8  ;;  %v2242_v62 = vand.u32 4294901760, %v2212_v8  ;;  %v2256_v20 = vand.u32 4294901760, %v1755_v45 }
  0x38   :  { %481 = vmatpush.msra.mxu1 %v1977_v0  ;;  %534 = vmatpush.msra.mxu2 %v2078_v36  ;;  %2788 = vst [vmem:[#allocation39_spill] sm:$0xff] %v2230_v31  ;;  %v2235_v36 = vand.u32 4294901760, %v597_v27 }
  0x39   :  { %454 = vmatpush.msra.mxu0 %v2085_v51  ;;  %571 = vmatpush.msra.mxu3 %v2016_v37  ;;  %v2239_v51 = vand.u32 4294901760, %v1756_v30 }
  0x3a   :  { %307 = vmatmul.f32.gmra.mxu1 %v1964_v59  ;;  %457 = vmatmul.f32.vlgmr.msra.gmra.mxu0 %v2092_v13  ;;  %v2247_v59 = vsub.f32 %v1757_v52, %v2217_v7  ;;  %v2261_v52 = vand.u32 4294901760, %v2230_v31  ;;  %v2264_v61 = vsub.f32 %v597_v27, %v2235_v36  ;;  %v1753_v27 = vld [vmem:[%s2691_s1 + $0x80] sm:$0xff] }
  0x3b   :  { %483 = vmatpush.msra.mxu1 %v2003_v26  ;;  %538 = vmatpush.msra.mxu2 %v2101_v43  ;;  %v654_v43 = vsub.f32 %v2200_v35, %v2225_v60  ;;  %v2274_v42 = vsub.f32 %v1756_v30, %v2239_v51  ;;  %v2291_v30 = vsub.f32 %v1755_v45, %v2256_v20  ;;  %v600_v26 = vsel %vm36_vm0, %v586_v33, 0 }
  0x3c   :  { %573 = vmatpush.msra.mxu3 %v2040_v54  ;;  %611 = vmatpush.msrb.mxu0 %v2182_v40  ;;  %2789 = vst [vmem:[#allocation40_spill] sm:$0xff] %v2247_v59  ;;  %v628_v63 = vand.u32 4294901760, %v2264_v61  ;;  %v2316_v0 = vand.u32 4294901760, %v600_v26 }
  0x3d   :  { %485 = vmatpush.msra.mxu1 %v2016_v37  ;;  %542 = vmatpush.msra.mxu2 %v2110_v32  ;;  %v660_v32 = vsub.f32 %v2212_v8, %v2242_v62  ;;  %2790 = vst [vmem:[#allocation41_spill] sm:$0xff] %v2274_v42  ;;  %v2276_v37 = vand.u32 4294901760, %v1754_v1  ;;  %v2288_v14 = vand.u32 4294901760, %v654_v43  ;;  %v2306_v45 = vand.u32 4294901760, %v2274_v42 }
  0x3e   :  { %575 = vmatpush.msra.mxu3 %v2055_v44  ;;  %613 = vmatpush.msrb.mxu0 %v2188_v28  ;;  %2792 = vst [vmem:[#allocation43_spill] sm:$0xff] %v2291_v30  ;;  %v635_v58 = vsub.f32 %v600_v26, %v2316_v0 }
  0x3f   :  { %487 = vmatpush.msra.mxu1 %v2040_v54  ;;  %544 = vmatmul.f32.vlgmr.msra.gmra.mxu2 %v2066_v22  ;;  %v2284_v54 = vand.u32 4294901760, %v2247_v59  ;;  %2791 = vst [vmem:[#allocation42_spill] sm:$0xff] %v2288_v14  ;;  %v2303_v43 = vand.u32 4294901760, %v660_v32  ;;  %v2309_v33 = vsub.f32 %v1754_v1, %v2276_v37  ;;  %v2321_v32 = vand.u32 4294901760, %v2291_v30 }
  0x40   :  { %577 = vmatmul.f32.vlgmr.msra.gmra.mxu3 %v2066_v22  ;;  %718 = vmatpush.msrb.mxu2 %v2200_v35  ;;  %v666_v22 = vsub.f32 %v2230_v31, %v2261_v52  ;;  %v2298_v35 = vand.u32 4294901760, %v1753_v27  ;;  %v636_v26 = vand.u32 4294901760, %v635_v58 }
  0x41   :  { %615 = vmatpush.msrb.mxu0 %v2207_v29  ;;  %760 = vmatpush.msrb.mxu3 %v2182_v40  ;;  %2793 = vst [vmem:[#allocation44_spill] sm:$0xff] %v2303_v43 }
  0x42   :  { %489 = vmatpush.msra.mxu1 %v2055_v44  ;;  %721 = vmatpush.msrb.mxu2 %v2212_v8  ;;  %v2794_v8 = vand.u32 4294901760, %v2092_v13  ;;  %v672_v44 = vsub.f32 %v2247_v59, %v2284_v54  ;;  %v2325_v1 = vand.u32 4294901760, %v666_v22  ;;  %v629_v13 = vsub.f32 %v2264_v61, %v628_v63 }
  0x43   :  { %617 = vmatpush.msrb.mxu0 %v2217_v7  ;;  %762 = vmatpush.msrb.mxu3 %v2188_v28 }
  0x44   :  { %462 = vmatmul.f32.gmra.mxu0 %v2145_v41  ;;  %493 = vmatmul.f32.vlgmr.msra.gmra.mxu1 %v2794_v8  ;;  %2795 = vst [vmem:[#allocation45_spill] sm:$0xff] %v2325_v1  ;;  %v2329_v8 = vsub.f32 %v1753_v27, %v2298_v35  ;;  %v2340_v22 = vand.u32 4294901760, %v672_v44  ;;  %v684_v27 = vsub.f32 %v2291_v30, %v2321_v32 }
  0x45   :  { %656 = vmatpush.msrb.mxu1 %v2288_v14  ;;  %724 = vmatpush.msrb.mxu2 %v2230_v31  ;;  %v678_v31 = vsub.f32 %v2274_v42, %v2306_v45  ;;  %v2336_v14 = vand.u32 4294901760, %v2309_v33 }
  0x46   :  { %619 = vmatpush.msrb.mxu0 %v2239_v51  ;;  %764 = vmatpush.msrb.mxu3 %v2207_v29  ;;  %2796 = vst [vmem:[#allocation46_spill] sm:$0xff] %v2340_v22 }
  0x47   :  { %662 = vmatpush.msrb.mxu1 %v2303_v43  ;;  %727 = vmatpush.msrb.mxu2 %v2247_v59  ;;  %v630_v59 = vand.u32 4294901760, %v629_v13  ;;  %v2350_v43 = vand.u32 4294901760, %v2329_v8  ;;  %v2354_v44 = vand.u32 4294901760, %v678_v31  ;;  %v2362_v13 = vand.u32 4294901760, %v684_v27 }
  0x48   :  { %621 = vmatpush.msrb.mxu0 %v2256_v20  ;;  %766 = vmatpush.msrb.mxu3 %v2217_v7  ;;  %v2797_v31 = vand.u32 4294901760, %v2145_v41  ;;  %v637_v27 = vsub.f32 %v635_v58, %v636_v26 }
  0x49   :  { %548 = vmatmul.f32.gmra.mxu2 %v2127_v25  ;;  %581 = vmatmul.f32.gmra.mxu3 %v2127_v25  ;;  %v690_v25 = vsub.f32 %v2309_v33, %v2336_v14 }
  0x4a   :  { %668 = vmatpush.msrb.mxu1 %v2325_v1  ;;  %730 = vmatpush.msrb.mxu2 %v2274_v42  ;;  %v891_v42 = vld [vmem:[%s2692_s0 + $0x13] sm:$0xff] }
  0x4b   :  { %623 = vmatpush.msrb.mxu0 %v2276_v37  ;;  %768 = vmatpush.msrb.mxu3 %v2239_v51  ;;  %v902_v1 = vsel %vm36_vm0, %v891_v42, 0  ;;  %v638_v42 = vand.u32 4294901760, %v637_v27  ;;  %v2813_v27 = vld [vmem:[#allocation28_spill] sm:$0xff] }
  0x4c   :  { %674 = vmatpush.msrb.mxu1 %v2340_v22  ;;  %733 = vmatpush.msrb.mxu2 %v2291_v30  ;;  %v696_v22 = vsub.f32 %v2329_v8, %v2350_v43  ;;  %v2373_v30 = vand.u32 4294901760, %v690_v25  ;;  %v2811_v25 = vld [vmem:[#allocation14_spill] sm:$0xff] }
  0x4d   :  { %625 = vmatpush.msrb.mxu0 %v2298_v35  ;;  %770 = vmatpush.msrb.mxu3 %v2256_v20 }
  0x4e   :  { %499 = vmatmul.f32.gmra.mxu1 %v2797_v31  ;;  %631 = vmatmul.f32.vlgmr.msrb.gmra.mxu0 %v630_v59  ;;  %v2382_v41 = vand.u32 4294901760, %v696_v22  ;;  %v2386_v59 = vand.u32 4294901760, %v902_v1  ;;  %v2810_v22 = vld [vmem:[#allocation24_spill] sm:$0xff] }
  0x4f   :  { %680 = vmatpush.msrb.mxu1 %v2354_v44  ;;  %736 = vmatpush.msrb.mxu2 %v2309_v33 }
  0x50   :  { %772 = vmatpush.msrb.mxu3 %v2276_v37  ;;  %799 = vmatpush.msra.mxu0 %v2225_v60 }
  0x51   :  { %686 = vmatpush.msrb.mxu1 %v2362_v13  ;;  %739 = vmatpush.msrb.mxu2 %v2329_v8 }
  0x52   :  { %774 = vmatpush.msrb.mxu3 %v2298_v35  ;;  %803 = vmatpush.msra.mxu0 %v2242_v62 }
  0x53   :  { %692 = vmatpush.msrb.mxu1 %v2373_v30  ;;  %742 = vmatmul.f32.vlgmr.msrb.gmra.mxu2 %v2264_v61  ;;  %v2396_v61 = vsub.f32 %v902_v1, %v2386_v59 }
  0x54   :  { %778 = vmatmul.f32.vlgmr.msrb.gmra.mxu3 %v628_v63  ;;  %916 = vmatpush.msra.mxu2 %v1807_v3  ;;  %v892_v63 = vld [vmem:[%s2692_s0 + $0x1b] sm:$0xff] }
  0x55   :  { %807 = vmatpush.msra.mxu0 %v2261_v52  ;;  %961 = vmatpush.msra.mxu3 %v1907_v38  ;;  %v905_v38 = vsel %vm36_vm0, %v892_v63, 0  ;;  %v2816_v63 = vld [vmem:[#allocation30_spill] sm:$0xff] }
  0x56   :  { %698 = vmatpush.msrb.mxu1 %v2382_v41  ;;  %918 = vmatpush.msra.mxu2 %v1809_v4  ;;  %v2412_v1 = vand.u32 4294901760, %v905_v38 }
  0x57   :  { %811 = vmatpush.msra.mxu0 %v2284_v54  ;;  %967 = vmatpush.msra.mxu3 %v1910_v39  ;;  %v933_v39 = vand.u32 4294901760, %v2396_v61 }
  0x58   :  { %639 = vmatmul.f32.gmra.mxu0 %v638_v42  ;;  %700 = vmatmul.f32.vlgmr.msrb.gmra.mxu1 %v2235_v36 }
  0x59   :  { %846 = vmatpush.msra.mxu1 %v2182_v40  ;;  %920 = vmatpush.msra.mxu2 %v1811_v5 }
  0x5a   :  { %815 = vmatpush.msra.mxu0 %v2306_v45  ;;  %973 = vmatpush.msra.mxu3 %v1931_v47  ;;  %v934_v47 = vsub.f32 %v2396_v61, %v933_v39 }
  0x5b   :  { %848 = vmatpush.msra.mxu1 %v2188_v28  ;;  %922 = vmatpush.msra.mxu2 %v1822_v9 }
  0x5c   :  { %819 = vmatpush.msra.mxu0 %v2321_v32  ;;  %979 = vmatpush.msra.mxu3 %v1956_v56  ;;  %v2426_v56 = vsub.f32 %v905_v38, %v2412_v1  ;;  %v2817_v38 = vld [vmem:[#allocation22_spill] sm:$0xff] }
  0x5d   :  { %747 = vmatmul.f32.gmra.mxu2 %v635_v58  ;;  %784 = vmatmul.f32.gmra.mxu3 %v636_v26  ;;  %v935_v58 = vand.u32 4294901760, %v934_v47  ;;  %v2812_v26 = vld [vmem:[#allocation17_spill] sm:$0xff]  ;;  %v2818_v47 = vld [vmem:[#allocation23_spill] sm:$0xff] }
  0x5e   :  { %850 = vmatpush.msra.mxu1 %v2207_v29  ;;  %924 = vmatpush.msra.mxu2 %v1824_v10 }
  0x5f   :  { %823 = vmatpush.msra.mxu0 %v2336_v14  ;;  %985 = vmatpush.msra.mxu3 %v1984_v2  ;;  %v941_v2 = vand.u32 4294901760, %v2426_v56 }
  0x60   :  { %852 = vmatpush.msra.mxu1 %v2217_v7  ;;  %926 = vmatpush.msra.mxu2 %v1826_v11 }
  0x61   :  { %827 = vmatpush.msra.mxu0 %v2350_v43  ;;  %991 = vmatpush.msra.mxu3 %v1996_v12  ;;  %v881_v12 = vld [vmem:[%s2692_s0 + $0x12] sm:$0xff] }
  0x62   :  { %704 = vmatmul.f32.gmra.mxu1 %v2316_v0  ;;  %829 = vmatmul.f32.vlgmr.msra.gmra.mxu0 %v2235_v36 }
  0x63   :  { %854 = vmatpush.msra.mxu1 %v2239_v51  ;;  %928 = vmatpush.msra.mxu2 %v1848_v18 }
  0x64   :  { %997 = vmatpush.msra.mxu3 %v2032_v48  ;;  %1023 = vmatpush.msrb.mxu0 %v1839_v15  ;;  %v942_v15 = vsub.f32 %v2426_v56, %v941_v2  ;;  %v2803_v48 = vld [vmem:[#allocation7_spill] sm:$0xff] }
  0x65   :  { %856 = vmatpush.msra.mxu1 %v2256_v20  ;;  %930 = vmatpush.msra.mxu2 %v1856_v21 }
  0x66   :  { %1003 = vmatpush.msra.mxu3 %v2051_v6  ;;  %1026 = vmatpush.msrb.mxu0 %v1843_v16  ;;  %v2798_v16 = vld [vmem:[#allocation4_spill] sm:$0xff] }
  0x67   :  { %858 = vmatpush.msra.mxu1 %v2276_v37  ;;  %936 = vmatmul.f32.vlgmr.msra.gmra.mxu2 %v935_v58  ;;  %v2804_v6 = vld [vmem:[#allocation8_spill] sm:$0xff]  ;;  %v2819_v58 = vld [vmem:[#allocation33_spill] sm:$0xff] }
  0x68   :  { %1005 = vmatmul.f32.vlgmr.msra.gmra.mxu3 %v2386_v59  ;;  %1104 = vmatpush.msrb.mxu2 %v1864_v23  ;;  %v2799_v23 = vld [vmem:[#allocation2_spill] sm:$0xff] }
  0x69   :  { %1029 = vmatpush.msrb.mxu0 %v1846_v17  ;;  %1151 = vmatpush.msrb.mxu3 %v1807_v3  ;;  %v943_v17 = vand.u32 4294901760, %v942_v15  ;;  %v2820_v15 = vld [vmem:[#allocation26_spill] sm:$0xff] }
  0x6a   :  { %860 = vmatpush.msra.mxu1 %v2298_v35  ;;  %1108 = vmatpush.msrb.mxu2 %v1867_v24  ;;  %v2800_v24 = vld [vmem:[#allocation5_spill] sm:$0xff] }
  0x6b   :  { %1032 = vmatpush.msrb.mxu0 %v1851_v19  ;;  %1153 = vmatpush.msrb.mxu3 %v1809_v4  ;;  %v2801_v19 = vld [vmem:[#allocation3_spill] sm:$0xff] }
  0x6c   :  { %833 = vmatmul.f32.gmra.mxu0 %v2316_v0  ;;  %862 = vmatmul.f32.vlgmr.msra.gmra.mxu1 %v2235_v36  ;;  %v2809_v36 = vld [vmem:[#allocation15_spill] sm:$0xff] }
  0x6d   :  { %1065 = vmatpush.msrb.mxu1 %v1807_v3  ;;  %1112 = vmatpush.msrb.mxu2 %v2798_v16  ;;  %v2802_v3 = vld [vmem:[#allocation6_spill] sm:$0xff] }
  0x6e   :  { %1035 = vmatpush.msrb.mxu0 %v2799_v23  ;;  %1155 = vmatpush.msrb.mxu3 %v1811_v5  ;;  %v2821_v16 = vld [vmem:[#allocation10_spill] sm:$0xff] }
  0x6f   :  { %1067 = vmatpush.msrb.mxu1 %v1809_v4  ;;  %1116 = vmatpush.msrb.mxu2 %v2800_v24  ;;  %v1176_v4 = vsel %vm36_vm0, %v881_v12, 0  ;;  %v2822_v24 = vld [vmem:[#allocation34_spill] sm:$0xff] }
  0x70   :  { %1038 = vmatpush.msrb.mxu0 %v2801_v19  ;;  %1157 = vmatpush.msrb.mxu3 %v1822_v9  ;;  %v2823_v19 = vld [vmem:[#allocation29_spill] sm:$0xff] }
  0x71   :  { %944 = vmatmul.f32.gmra.mxu2 %v943_v17  ;;  %1009 = vmatmul.f32.gmra.mxu3 %v2412_v1 }
  0x72   :  { %1069 = vmatpush.msrb.mxu1 %v1811_v5  ;;  %1120 = vmatpush.msrb.mxu2 %v2802_v3  ;;  %v2476_v5 = vand.u32 4294901760, %v1176_v4 }
  0x73   :  { %1041 = vmatpush.msrb.mxu0 %v2803_v48  ;;  %1159 = vmatpush.msrb.mxu3 %v1824_v10 }
  0x74   :  { %1071 = vmatpush.msrb.mxu1 %v1822_v9  ;;  %1124 = vmatpush.msrb.mxu2 %v1894_v34  ;;  %v1206_v9 = vsub.f32 %v1176_v4, %v2476_v5  ;;  %v2805_v34 = vld [vmem:[#allocation9_spill] sm:$0xff]  ;;  %v2826_v4 = vld [vmem:[#allocation16_spill] sm:$0xff] }
  0x75   :  { %1044 = vmatpush.msrb.mxu0 %v2804_v6  ;;  %1161 = vmatpush.msrb.mxu3 %v1826_v11  ;;  %v2827_v6 = vld [vmem:[#allocation42_spill] sm:$0xff] }
  0x76   :  { %866 = vmatmul.f32.gmra.mxu1 %v2316_v0  ;;  %1047 = vmatmul.f32.vlgmr.msrb.gmra.mxu0 %v2396_v61  ;;  %v2808_v0 = vld [vmem:[#allocation11_spill] sm:$0xff]  ;;  %v2815_v61 = vld [vmem:[#allocation20_spill] sm:$0xff] }
  0x77   :  { %1073 = vmatpush.msrb.mxu1 %v1824_v10  ;;  %1128 = vmatpush.msrb.mxu2 %v1936_v49  ;;  %v882_v10 = vld [vmem:[%s2692_s0 + $0x1a] sm:$0xff]  ;;  %v1207_v49 = vand.u32 4294901760, %v1206_v9 }
  0x78   :  { %1163 = vmatpush.msrb.mxu3 %v1848_v18  ;;  %1190 = vmatpush.msra.mxu0 %v1927_v46 }
  0x79   :  { %1075 = vmatpush.msrb.mxu1 %v1826_v11  ;;  %1132 = vmatpush.msrb.mxu2 %v1959_v57  ;;  %v1179_v11 = vsel %vm36_vm0, %v882_v10, 0  ;;  %v2806_v57 = vld [vmem:[#allocation12_spill] sm:$0xff] }
  0x7a   :  { %1165 = vmatpush.msrb.mxu3 %v1856_v21  ;;  %1192 = vmatpush.msra.mxu0 %v1938_v50  ;;  %v2828_v10 = vld [vmem:[#allocation36_spill] sm:$0xff] }
  0x7b   :  { %1077 = vmatpush.msrb.mxu1 %v1848_v18  ;;  %1134 = vmatmul.f32.vlgmr.msrb.gmra.mxu2 %v2386_v59  ;;  %v2504_v18 = vand.u32 4294901760, %v1179_v11 }
  0x7c   :  { %1167 = vmatmul.f32.vlgmr.msrb.gmra.mxu3 %v2386_v59  ;;  %1297 = vmatpush.msra.mxu2 %v1949_v53  ;;  %v2807_v53 = vld [vmem:[#allocation21_spill] sm:$0xff]  ;;  %v2814_v59 = vld [vmem:[#allocation18_spill] sm:$0xff] }
  0x7d   :  { %1194 = vmatpush.msra.mxu0 %v1952_v55  ;;  %1339 = vmatpush.msra.mxu3 %v1927_v46  ;;  %v1214_v31 = vsub.f32 %v1179_v11, %v2504_v18  ;;  %v2829_v11 = vld [vmem:[#allocation19_spill] sm:$0xff] }
  0x7e   :  { %1079 = vmatpush.msrb.mxu1 %v1856_v21  ;;  %1300 = vmatpush.msra.mxu2 %v2805_v34  ;;  %v1208_v21 = vsub.f32 %v1206_v9, %v1207_v49  ;;  %v2830_v34 = vld [vmem:[#allocation44_spill] sm:$0xff] }
  0x7f   :  { %1196 = vmatpush.msra.mxu0 %v2806_v57  ;;  %1341 = vmatpush.msra.mxu3 %v1938_v50 }
  0x80   :  { %1052 = vmatmul.f32.gmra.mxu0 %v2426_v56  ;;  %1083 = vmatmul.f32.vlgmr.msrb.gmra.mxu1 %v933_v39  ;;  %v1209_v42 = vand.u32 4294901760, %v1208_v21  ;;  %v1215_v39 = vand.u32 4294901760, %v1214_v31  ;;  %v2824_v56 = vld [vmem:[#allocation13_spill] sm:$0xff] }
  0x81   :  { %1235 = vmatpush.msra.mxu1 %v2807_v53  ;;  %1303 = vmatpush.msra.mxu2 %v2808_v0  ;;  %v2831_v0 = vld [vmem:[#allocation25_spill] sm:$0xff] }
  0x82   :  { %1198 = vmatpush.msra.mxu0 %v2809_v36  ;;  %1343 = vmatpush.msra.mxu3 %v1952_v55  ;;  %v1216_v17 = vsub.f32 %v1214_v31, %v1215_v39  ;;  %v2832_v21 = vld [vmem:[#allocation45_spill] sm:$0xff] }
  0x83   :  { %1241 = vmatpush.msra.mxu1 %v2810_v22  ;;  %1306 = vmatpush.msra.mxu2 %v2811_v25  ;;  %v2833_v25 = vld [vmem:[#allocation27_spill] sm:$0xff] }
  0x84   :  { %1200 = vmatpush.msra.mxu0 %v2812_v26  ;;  %1345 = vmatpush.msra.mxu3 %v2806_v57  ;;  %v1217_v3 = vand.u32 4294901760, %v1216_v17 }
  0x85   :  { %1138 = vmatmul.f32.gmra.mxu2 %v2412_v1  ;;  %1171 = vmatmul.f32.gmra.mxu3 %v2412_v1  ;;  %v1449_v1 = vld [vmem:[%s2692_s0 + $0x14] sm:$0xff] }
  0x86   :  { %1247 = vmatpush.msra.mxu1 %v2813_v27  ;;  %1309 = vmatpush.msra.mxu2 %v2814_v59  ;;  %v1460_v23 = vsel %vm36_vm0, %v1449_v1, 0  ;;  %v2834_v27 = vld [vmem:[#allocation46_spill] sm:$0xff] }
  0x87   :  { %1202 = vmatpush.msra.mxu0 %v2815_v61  ;;  %1347 = vmatpush.msra.mxu3 %v2809_v36  ;;  %v2540_v12 = vand.u32 4294901760, %v1460_v23 }
  0x88   :  { %1253 = vmatpush.msra.mxu1 %v2816_v63  ;;  %1312 = vmatpush.msra.mxu2 %v2817_v38  ;;  %v2835_v63 = vld [vmem:[#allocation31_spill] sm:$0xff] }
  0x89   :  { %1204 = vmatpush.msra.mxu0 %v2818_v47  ;;  %1349 = vmatpush.msra.mxu3 %v2812_v26 }
  0x8a   :  { %1089 = vmatmul.f32.gmra.mxu1 %v941_v2  ;;  %1210 = vmatmul.f32.vlgmr.msra.gmra.mxu0 %v1209_v42  ;;  %v2825_v2 = vld [vmem:[#allocation35_spill] sm:$0xff] }
  0x8b   :  { %1259 = vmatpush.msra.mxu1 %v2819_v58  ;;  %1315 = vmatpush.msra.mxu2 %v2820_v15 }
  0x8c   :  { %1351 = vmatpush.msra.mxu3 %v2815_v61  ;;  %1378 = vmatpush.msrb.mxu0 %v2821_v16 }
  0x8d   :  { %1265 = vmatpush.msra.mxu1 %v2822_v24  ;;  %1318 = vmatpush.msra.mxu2 %v2823_v19 }
  0x8e   :  { %1353 = vmatpush.msra.mxu3 %v2818_v47  ;;  %1382 = vmatpush.msrb.mxu0 %v2824_v56 }
  0x8f   :  { %1271 = vmatpush.msra.mxu1 %v2825_v2  ;;  %1321 = vmatmul.f32.vlgmr.msra.gmra.mxu2 %v1206_v9  ;;  %v1450_v9 = vld [vmem:[%s2692_s0 + $0x1c] sm:$0xff] }
  0x90   :  { %1357 = vmatmul.f32.vlgmr.msra.gmra.mxu3 %v1207_v49  ;;  %1474 = vmatpush.msrb.mxu2 %v2182_v40  ;;  %v2543_v48 = vpop.f32.mrf.mxu0  ;;  %v2555_v49 = vsub.f32 %v1460_v23, %v2540_v12  ;;  %v1463_v53 = vsel %vm36_vm0, %v1450_v9, 0 }
  0x91   :  { %1386 = vmatpush.msrb.mxu0 %v2826_v4  ;;  %1519 = vmatpush.msrb.mxu3 %v2827_v6  ;;  %v2568_v59 = vand.u32 4294901760, %v1463_v53 }
  0x92   :  { %1277 = vmatpush.msra.mxu1 %v2828_v10  ;;  %1476 = vmatpush.msrb.mxu2 %v2188_v28  ;;  %v1491_v22 = vand.u32 4294901760, %v2555_v49 }
  0x93   :  { %1390 = vmatpush.msrb.mxu0 %v2829_v11  ;;  %1525 = vmatpush.msrb.mxu3 %v2830_v34 }
  0x94   :  { %1218 = vmatmul.f32.gmra.mxu0 %v1217_v3  ;;  %1279 = vmatmul.f32.vlgmr.msra.gmra.mxu1 %v2476_v5  ;;  %v1492_v38 = vsub.f32 %v2555_v49, %v1491_v22 }
  0x95   :  { %1425 = vmatpush.msrb.mxu1 %v1927_v46  ;;  %1478 = vmatpush.msrb.mxu2 %v2207_v29 }
  0x96   :  { %1394 = vmatpush.msrb.mxu0 %v2831_v0  ;;  %1531 = vmatpush.msrb.mxu3 %v2832_v21 }
  0x97   :  { %1427 = vmatpush.msrb.mxu1 %v1938_v50  ;;  %1480 = vmatpush.msrb.mxu2 %v2217_v7 }
  0x98   :  { %1398 = vmatpush.msrb.mxu0 %v2833_v25  ;;  %1537 = vmatpush.msrb.mxu3 %v2834_v27 }
  0x99   :  { %1326 = vmatmul.f32.gmra.mxu2 %v1214_v31  ;;  %1363 = vmatmul.f32.gmra.mxu3 %v1215_v39  ;;  %v2570_v46 = vpop.f32.mrf.mxu1  ;;  %v2574_v42 = vpop.f32.mrf.mxu0  ;;  %v2836_v31 = vld [vmem:[#allocation32_spill] sm:$0xff] }
  0x9a   :  { %1429 = vmatpush.msrb.mxu1 %v1952_v55  ;;  %1482 = vmatpush.msrb.mxu2 %v2239_v51  ;;  %v2576_v50 = vpop.f32.mrf.mxu2  ;;  %v2586_v55 = vsub.f32 %v1463_v53, %v2568_v59  ;;  %v2590_v39 = vpop.f32.mrf.mxu3 }
  0x9b   :  { %1402 = vmatpush.msrb.mxu0 %v2835_v63  ;;  %1543 = vmatpush.msrb.mxu3 %v2354_v44  ;;  %v1493_v44 = vand.u32 4294901760, %v1492_v38 }
  0x9c   :  { %1431 = vmatpush.msrb.mxu1 %v2806_v57  ;;  %1484 = vmatpush.msrb.mxu2 %v2256_v20  ;;  %v2837_v57 = vld [vmem:[#allocation37_spill] sm:$0xff]  ;;  %v1499_v1 = vand.u32 4294901760, %v2586_v55 }
  0x9d   :  { %1406 = vmatpush.msrb.mxu0 %v2836_v31  ;;  %1549 = vmatpush.msrb.mxu3 %v2362_v13  ;;  %v2838_v13 = vld [vmem:[#allocation38_spill] sm:$0xff] }
  0x9e   :  { %1283 = vmatmul.f32.gmra.mxu1 %v2504_v18  ;;  %1408 = vmatmul.f32.vlgmr.msrb.gmra.mxu0 %v2476_v5 }
  0x9f   :  { %1433 = vmatpush.msrb.mxu1 %v2809_v36  ;;  %1486 = vmatpush.msrb.mxu2 %v2276_v37 }
  0xa0   :  { %1555 = vmatpush.msrb.mxu3 %v2373_v30  ;;  %1581 = vmatpush.msra.mxu0 %v2837_v57  ;;  %v1500_v30 = vsub.f32 %v2586_v55, %v1499_v1  ;;  %v2673_v57 = vld [vmem:[%s2693_s2] ss:$0 sm:$0xff] }
  0xa1   :  { %1435 = vmatpush.msrb.mxu1 %v2812_v26  ;;  %1488 = vmatpush.msrb.mxu2 %v2298_v35 }
  0xa2   :  { %1561 = vmatpush.msrb.mxu3 %v2382_v41  ;;  %1584 = vmatpush.msra.mxu0 %v2838_v13  ;;  %v2839_v41 = vld [vmem:[#allocation39_spill] sm:$0xff]  ;;  %v1501_v15 = vand.u32 4294901760, %v1500_v30 }
  0xa3   :  { %1437 = vmatpush.msrb.mxu1 %v2815_v61  ;;  %1494 = vmatmul.f32.vlgmr.msrb.gmra.mxu2 %v1493_v44  ;;  %v2604_v36 = vpop.f32.mrf.mxu1  ;;  %v2611_v26 = vpop.f32.mrf.mxu0  ;;  %v2840_v61 = vld [vmem:[#allocation40_spill] sm:$0xff] }
  0xa4   :  { %1563 = vmatmul.f32.vlgmr.msrb.gmra.mxu3 %v2540_v12  ;;  %1662 = vmatpush.msra.mxu2 %v2225_v60  ;;  %v2613_v58 = vpop.f32.mrf.mxu2  ;;  %v2621_v60 = vpop.f32.mrf.mxu3  ;;  %v147_v17 = vadd.f32 %v2604_v36, %v2574_v42 }
  0xa5   :  { %1587 = vmatpush.msra.mxu0 %v2839_v41  ;;  %1439 = vmatpush.msrb.mxu1 %v2818_v47  ;;  %v2841_v47 = vld [vmem:[#allocation41_spill] sm:$0xff] }
  0xa6   :  { %1666 = vmatpush.msra.mxu2 %v2242_v62  ;;  %1709 = vmatpush.msra.mxu3 %v2182_v40  ;;  %v2842_v62 = vld [vmem:[#allocation43_spill] sm:$0xff] }
  0xa7   :  { %1590 = vmatpush.msra.mxu0 %v2840_v61  ;;  %1441 = vmatmul.f32.vlgmr.msrb.gmra.mxu1 %v2476_v5 }
  0xa8   :  { %1412 = vmatmul.f32.gmra.mxu0 %v2504_v18  ;;  %1623 = vmatpush.msra.mxu1 %v2182_v40 }
  0xa9   :  { %1670 = vmatpush.msra.mxu2 %v2261_v52  ;;  %1711 = vmatpush.msra.mxu3 %v2188_v28 }
  0xaa   :  { %1593 = vmatpush.msra.mxu0 %v2841_v47  ;;  %1625 = vmatpush.msra.mxu1 %v2188_v28 }
  0xab   :  { %1674 = vmatpush.msra.mxu2 %v2284_v54  ;;  %1713 = vmatpush.msra.mxu3 %v2207_v29 }
  0xac   :  { %1596 = vmatpush.msra.mxu0 %v2842_v62  ;;  %1502 = vmatmul.f32.gmra.mxu2 %v1501_v15 }
  0xad   :  { %1567 = vmatmul.f32.gmra.mxu3 %v2568_v59  ;;  %1627 = vmatpush.msra.mxu1 %v2207_v29  ;;  %v304_v40 = vpop.f32.mrf.mxu1  ;;  %v275_v52 = vpop.f32.mrf.mxu0 }
  0xae   :  { %1678 = vmatpush.msra.mxu2 %v2306_v45  ;;  %1715 = vmatpush.msra.mxu3 %v2217_v7  ;;  %v347_v5 = vpop.f32.mrf.mxu2 }
  0xaf   :  { %1599 = vmatpush.msra.mxu0 %v2309_v33  ;;  %1629 = vmatpush.msra.mxu1 %v2217_v7  ;;  %v416_v54 = vpop.f32.mrf.mxu3 }
  0xb0   :  { %1682 = vmatpush.msra.mxu2 %v2321_v32  ;;  %1717 = vmatpush.msra.mxu3 %v2239_v51 }
  0xb1   :  { %1602 = vmatpush.msra.mxu0 %v2329_v8  ;;  %1445 = vmatmul.f32.gmra.mxu1 %v2504_v18 }
  0xb2   :  { %1605 = vmatmul.f32.vlgmr.msra.gmra.mxu0 %v2555_v49  ;;  %1631 = vmatpush.msra.mxu1 %v2239_v51 }
  0xb3   :  { %1686 = vmatpush.msra.mxu2 %v2336_v14  ;;  %1719 = vmatpush.msra.mxu3 %v2256_v20 }
  0xb4   :  { %1633 = vmatpush.msra.mxu1 %v2256_v20 }
  0xb5   :  { %1690 = vmatpush.msra.mxu2 %v2350_v43  ;;  %1721 = vmatpush.msra.mxu3 %v2276_v37  ;;  %v143_v43 = vadd.f32 %v2570_v46, %v2543_v48 }
  0xb6   :  { %1635 = vmatpush.msra.mxu1 %v2276_v37  ;;  %1692 = vmatmul.f32.vlgmr.msra.gmra.mxu2 %v2540_v12 }
  0xb7   :  { %1723 = vmatpush.msra.mxu3 %v2298_v35  ;;  %v308_v7 = vpop.f32.mrf.mxu1  ;;  %v458_v14 = vpop.f32.mrf.mxu0  ;;  %v185_v8 = vadd.f32 %v2576_v50, %v143_v43 }
  0xb8   :  { %1637 = vmatpush.msra.mxu1 %v2298_v35  ;;  %1725 = vmatmul.f32.vlgmr.msra.gmra.mxu3 %v2540_v12  ;;  %v355_v51 = vpop.f32.mrf.mxu2  ;;  %v420_v20 = vpop.f32.mrf.mxu3  ;;  %v190_v12 = vadd.f32 %v2613_v58, %v147_v17 }
  0xb9   :  { %1641 = vmatmul.f32.vlgmr.msra.gmra.mxu1 %v1491_v22  ;;  %v221_v16 = vadd.f32 %v2590_v39, %v185_v8 }
  0xba   :  { %1610 = vmatmul.f32.gmra.mxu0 %v2586_v55  ;;  %v227_v4 = vadd.f32 %v2621_v60, %v190_v12 }
  0xbb   :  { %v272_v23 = vadd.f32 %v2611_v26, %v221_v16 }
  0xbc   :  { %v276_v6 = vadd.f32 %v275_v52, %v227_v4 }
  0xbd   :  { %v305_v19 = vadd.f32 %v304_v40, %v272_v23 }
  0xbe   :  { %1696 = vmatmul.f32.gmra.mxu2 %v2568_v59  ;;  %v309_v34 = vadd.f32 %v308_v7, %v276_v6 }
  0xbf   :  { %v348_v48 = vadd.f32 %v347_v5, %v305_v19 }
  0xc0   :  { %1729 = vmatmul.f32.gmra.mxu3 %v2568_v59  ;;  %v356_v27 = vadd.f32 %v355_v51, %v309_v34 }
  0xc1   :  { %1647 = vmatmul.f32.gmra.mxu1 %v1499_v1  ;;  %v494_v37 = vpop.f32.mrf.mxu1  ;;  %v463_v29 = vpop.f32.mrf.mxu0  ;;  %v417_v10 = vadd.f32 %v416_v54, %v348_v48 }
  0xc2   :  { %v545_v35 = vpop.f32.mrf.mxu2  ;;  %v421_v42 = vadd.f32 %v420_v20, %v356_v27 }
  0xc3   :  { %v578_v28 = vpop.f32.mrf.mxu3  ;;  %v459_v49 = vadd.f32 %v458_v14, %v417_v10 }
  0xc4   :  { %v464_v55 = vadd.f32 %v463_v29, %v421_v42 }
  0xc5   :  { %v495_v21 = vadd.f32 %v494_v37, %v459_v49 }
  0xc7   :  { %v546_v59 = vadd.f32 %v545_v35, %v495_v21 }
  0xc9   :  { %v579_v31 = vadd.f32 %v578_v28, %v546_v59 }
  0xcb   :  { %v500_v45 = vpop.f32.mrf.mxu1  ;;  %v632_v33 = vpop.f32.mrf.mxu0 }
  0xcc   :  { %v549_v32 = vpop.f32.mrf.mxu2  ;;  %v582_v18 = vpop.f32.mrf.mxu3  ;;  %v501_v13 = vadd.f32 %v500_v45, %v464_v55 }
  0xce   :  { %v550_v41 = vadd.f32 %v549_v32, %v501_v13 }
  0xd0   :  { %v583_v62 = vadd.f32 %v582_v18, %v550_v41 }
  0xd5   :  { %v701_v24 = vpop.f32.mrf.mxu1  ;;  %v640_v56 = vpop.f32.mrf.mxu0 }
  0xd6   :  { %v743_v2 = vpop.f32.mrf.mxu2  ;;  %v702_v9 = vadd.f32 %v701_v24, %v632_v33 }
  0xd7   :  { %v779_v3 = vpop.f32.mrf.mxu3 }
  0xd8   :  { %v744_v22 = vadd.f32 %v743_v2, %v702_v9 }
  0xda   :  { %v780_v46 = vadd.f32 %v779_v3, %v744_v22 }
  0xdf   :  { %v705_v11 = vpop.f32.mrf.mxu1  ;;  %v830_v53 = vpop.f32.mrf.mxu0 }
  0xe0   :  { %v748_v0 = vpop.f32.mrf.mxu2  ;;  %v785_v25 = vpop.f32.mrf.mxu3  ;;  %v706_v50 = vadd.f32 %v705_v11, %v640_v56  ;;  %v831_v63 = vadd.f32 %v830_v53, %v780_v46 }
  0xe2   :  { %v749_v36 = vadd.f32 %v748_v0, %v706_v50 }
  0xe4   :  { %v786_v61 = vadd.f32 %v785_v25, %v749_v36 }
  0xe9   :  { %v863_v38 = vpop.f32.mrf.mxu1  ;;  %v834_v39 = vpop.f32.mrf.mxu0 }
  0xea   :  { %v864_v44 = vadd.f32 %v863_v38, %v831_v63  ;;  %v937_v1 = vpop.f32.mrf.mxu2  ;;  %v835_v15 = vadd.f32 %v834_v39, %v786_v61 }
  0xeb   :  { %v1006_v26 = vpop.f32.mrf.mxu3 }
  0xec   :  { %v870_v30 = vadd.f32 %v864_v44, %v579_v31  ;;  %v1007_v56 = vadd.f32 %v1006_v26, %v937_v1 }
  0xee   :  { %v875_v58 = vadd.f32 %v2673_v57, %v870_v30 }
  0xf0   :  { %v877_v60 = vmax.f32 %v875_v58, 0.0 }
  0xf2   :  { %879 = vst [vmem:[%s2694_s3] sm:$0xff] %v877_v60 }
  0xf3   :  { %v867_v47 = vpop.f32.mrf.mxu1  ;;  %v1048_v52 = vpop.f32.mrf.mxu0 }
  0xf4   :  { %v868_v40 = vadd.f32 %v867_v47, %v835_v15  ;;  %v945_v5 = vpop.f32.mrf.mxu2  ;;  %v1010_v7 = vpop.f32.mrf.mxu3  ;;  %v1049_v2 = vadd.f32 %v1048_v52, %v1007_v56 }
  0xf5   :  { %v1011_v6 = vadd.f32 %v1010_v7, %v945_v5 }
  0xf6   :  { %v871_v54 = vadd.f32 %v868_v40, %v583_v62 }
  0xf8   :  { %v876_v14 = vadd.f32 %v2673_v57, %v871_v54 }
  0xfa   :  { %v878_v51 = vmax.f32 %v876_v14, 0.0 }
  0xfc   :  { %880 = vst [vmem:[%s2694_s3 + $0x8] sm:$0xff] %v878_v51 }
  0xfd   :  { %v1084_v20 = vpop.f32.mrf.mxu1  ;;  %v1053_v37 = vpop.f32.mrf.mxu0 }
  0xfe   :  { %v1135_v29 = vpop.f32.mrf.mxu2  ;;  %v1085_v12 = vadd.f32 %v1084_v20, %v1049_v2  ;;  %v1054_v11 = vadd.f32 %v1053_v37, %v1011_v6 }
  0xff   :  { %v1168_v35 = vpop.f32.mrf.mxu3 }
 0x100   :  { %v1136_v10 = vadd.f32 %v1135_v29, %v1085_v12 }
 0x102   :  { %v1169_v34 = vadd.f32 %v1168_v35, %v1136_v10 }
 0x107   :  { %v1090_v28 = vpop.f32.mrf.mxu1  ;;  %v1211_v43 = vpop.f32.mrf.mxu0 }
 0x108   :  { %v1139_v45 = vpop.f32.mrf.mxu2  ;;  %v1172_v33 = vpop.f32.mrf.mxu3  ;;  %v1091_v49 = vadd.f32 %v1090_v28, %v1054_v11  ;;  %v1212_v53 = vadd.f32 %v1211_v43, %v1169_v34 }
 0x10a   :  { %v1140_v22 = vadd.f32 %v1139_v45, %v1091_v49 }
 0x10c   :  { %v1173_v42 = vadd.f32 %v1172_v33, %v1140_v22 }
 0x111   :  { %v1280_v32 = vpop.f32.mrf.mxu1  ;;  %v1219_v8 = vpop.f32.mrf.mxu0 }
 0x112   :  { %v1322_v18 = vpop.f32.mrf.mxu2  ;;  %v1281_v25 = vadd.f32 %v1280_v32, %v1212_v53  ;;  %v1220_v38 = vadd.f32 %v1219_v8, %v1173_v42 }
 0x113   :  { %v1358_v16 = vpop.f32.mrf.mxu3 }
 0x114   :  { %v1323_v50 = vadd.f32 %v1322_v18, %v1281_v25 }
 0x116   :  { %v1359_v39 = vadd.f32 %v1358_v16, %v1323_v50 }
 0x11b   :  { %v1284_v17 = vpop.f32.mrf.mxu1  ;;  %v1409_v23 = vpop.f32.mrf.mxu0 }
 0x11c   :  { %v1327_v24 = vpop.f32.mrf.mxu2  ;;  %v1364_v19 = vpop.f32.mrf.mxu3  ;;  %v1285_v44 = vadd.f32 %v1284_v17, %v1220_v38  ;;  %v1410_v13 = vadd.f32 %v1409_v23, %v1359_v39 }
 0x11e   :  { %v1328_v41 = vadd.f32 %v1327_v24, %v1285_v44 }
 0x120   :  { %v1365_v52 = vadd.f32 %v1364_v19, %v1328_v41 }
 0x124   :  { %v1442_v3 = vpop.f32.mrf.mxu1 }
 0x125   :  { %v1413_v48 = vpop.f32.mrf.mxu0  ;;  %v1443_v61 = vadd.f32 %v1442_v3, %v1410_v13 }
 0x126   :  { %v1495_v4 = vpop.f32.mrf.mxu2  ;;  %v1414_v7 = vadd.f32 %v1413_v48, %v1365_v52 }
 0x127   :  { %v1564_v9 = vpop.f32.mrf.mxu3 }
 0x128   :  { %v1565_v59 = vadd.f32 %v1564_v9, %v1495_v4 }
 0x12e   :  { %v1446_v0 = vpop.f32.mrf.mxu1 }
 0x12f   :  { %v1503_v21 = vpop.f32.mrf.mxu2  ;;  %v1606_v27 = vpop.f32.mrf.mxu0  ;;  %v1447_v37 = vadd.f32 %v1446_v0, %v1414_v7 }
 0x130   :  { %v1568_v46 = vpop.f32.mrf.mxu3  ;;  %v1607_v63 = vadd.f32 %v1606_v27, %v1565_v59 }
 0x131   :  { %v1569_v26 = vadd.f32 %v1568_v46, %v1503_v21 }
 0x136   :  { %v1642_v55 = vpop.f32.mrf.mxu1 }
 0x137   :  { %v1643_v31 = vadd.f32 %v1642_v55, %v1607_v63  ;;  %v1611_v36 = vpop.f32.mrf.mxu0 }
 0x138   :  { %v1612_v15 = vadd.f32 %v1611_v36, %v1569_v26 }
 0x139   :  { %v1693_v1 = vpop.f32.mrf.mxu2 }
 0x13a   :  { %v1694_v30 = vadd.f32 %v1693_v1, %v1643_v31 }
 0x13b   :  { %v1726_v58 = vpop.f32.mrf.mxu3 }
 0x13c   :  { %v1727_v60 = vadd.f32 %v1726_v58, %v1694_v30 }
 0x13e   :  { %v1733_v47 = vadd.f32 %v1727_v60, %v1443_v61  ;;  %v1648_v62 = vpop.f32.mrf.mxu1 }
 0x13f   :  { %v1649_v40 = vadd.f32 %v1648_v62, %v1612_v15 }
 0x140   :  { %v1735_v5 = vadd.f32 %v2673_v57, %v1733_v47 }
 0x141   :  { %v1697_v54 = vpop.f32.mrf.mxu2 }
 0x142   :  { %v1737_v14 = vmax.f32 %v1735_v5, 0.0  ;;  %v1698_v51 = vadd.f32 %v1697_v54, %v1649_v40 }
 0x143   :  { %v1730_v20 = vpop.f32.mrf.mxu3 }
 0x144   :  { %1739 = vst [vmem:[%s2694_s3 + $0x10] sm:$0xff] %v1737_v14  ;;  %v1731_v29 = vadd.f32 %v1730_v20, %v1698_v51 }
 0x146   :  { %v1734_v35 = vadd.f32 %v1731_v29, %v1447_v37 }
 0x148   :  { %v1736_v28 = vadd.f32 %v2673_v57, %v1734_v35 }
 0x14a   :  { %v1738_v43 = vmax.f32 %v1736_v28, 0.0 }
 0x14c   :  { %1740 = vst [vmem:[%s2694_s3 + $0x18] sm:$0xff] %v1738_v43 }

</bundles_post_ra>
